<compile_context>
chip_gen: v5e
topology: v5e:2x2
jax: 0.10.0
libtpu: 0.0.40
codegen_flags: <defaults>
</compile_context>

<pallas_src>
import functools

import jax
import jax.numpy as jnp
from jax.experimental import pallas as pl
from jax.experimental.pallas import tpu as pltpu


def _attn_group_kernel(gate_ref, q_ref, k_ref, v_ref, m_ref,
                       wq_ref, wk_ref, wv_ref, out_ref, *attn_refs,
                       group_size, head_dim, where_to_add_relpos,
                       compute_dtype, approx_recip):
    """One (batch, head-group) tile; G = group_size heads per grid step.

    Block shapes:
      gate_ref          : (1, G, 1, 1)  sigmoid(gating) for the heads in this group
      q_ref/k_ref/v_ref : (1, T, E)
      m_ref             : (1, G, T, T)  raw mask, or softmax(mask) when after_gating
      wq/wk/wv_ref      : (1, E, G*Dh)  per-group slice of W^T (Wq pre-scaled)
      out_ref           : (1, T, G*Dh)  lane-dense slice of the (B, T, E) output
      attn_refs[0]      : (1, G, T, T)  (optional) attention probabilities
    """
    G, Dh = group_size, head_dim

    xq = q_ref[0].astype(compute_dtype)        # (T, E)
    xk = k_ref[0].astype(compute_dtype)
    xv = v_ref[0].astype(compute_dtype)

    # Grouped per-head projections: MXU N dimension is G*Dh (>=128 when possible).
    # The E**-0.5 softmax scale is folded into Wq in the wrapper.
    qh = jnp.dot(xq, wq_ref[0], preferred_element_type=jnp.float32)   # (T, G*Dh)
    kh = jnp.dot(xk, wk_ref[0], preferred_element_type=jnp.float32)
    vh = jnp.dot(xv, wv_ref[0], preferred_element_type=jnp.float32)

    T = xq.shape[0]
    q3 = qh.reshape(T, G, Dh).astype(compute_dtype)
    k3 = kh.reshape(T, G, Dh).astype(compute_dtype)
    v3 = vh.reshape(T, G, Dh).astype(compute_dtype)

    # Per-head logits: batch over the G heads, contract the Dh axis (no transposes).
    logits = jnp.einsum('tgd,sgd->gts', q3, k3,
                        preferred_element_type=jnp.float32)           # (G, T, T)

    mh = m_ref[0].astype(jnp.float32)                                  # (G, T, T)
    if where_to_add_relpos == 'before':
        logits = logits + mh

    # Numerically stable softmax in f32; division via the EUP reciprocal slot.
    logits = logits - jnp.max(logits, axis=-1, keepdims=True)
    e = jnp.exp(logits)
    content = e * pl.reciprocal(jnp.sum(e, axis=-1, keepdims=True),
                                approx=approx_recip)

    attn = content
    if where_to_add_relpos == 'after':
        attn = content + mh
    elif where_to_add_relpos == 'after_gating':
        g = gate_ref[0]                        # (G, 1, 1) sigmoid(gating_param)
        attn = (1.0 - g) * content + g * mh    # mh = softmax(mask), precomputed
        attn = attn * pl.reciprocal(jnp.sum(attn, axis=-1, keepdims=True),
                                    approx=approx_recip)

    # attn @ V per head, emitted directly in the lane-dense (T, G*Dh) layout so the
    # (B, T, E) output block is written with full-width (unmasked) stores.
    outg = jnp.einsum('gts,sgd->tgd', attn.astype(compute_dtype), v3,
                      preferred_element_type=jnp.float32)              # (T, G, Dh)
    out_ref[0] = outg.reshape(T, G * Dh).astype(out_ref.dtype)

    if attn_refs:
        attn_refs[0][0] = attn.astype(attn_refs[0].dtype)


def attention_rel_scl(query, key, value, attn_mask, wq, wk, wv, gating, num_heads,
                      where_to_add_relpos='after_gating',
                      compute_dtype=jnp.bfloat16, return_attn=True,
                      attn_dtype=jnp.float32, head_group_size=None):
    """Forward of Attention_Rel_Scl (conv_projection=False path)."""
    B, T, E = query.shape
    H = num_heads
    assert E % H == 0, "emb_size must be divisible by num_heads"
    Dh = E // H
    scale = float(E) ** (-0.5)

    compute_dtype = jnp.dtype(compute_dtype)
    attn_dtype = jnp.dtype(attn_dtype)
    f32 = jnp.dtype(jnp.float32)
    mask_dtype = f32 if compute_dtype == f32 else compute_dtype   # halve the T*T stream in bf16 mode
    out_dtype = query.dtype

    # ---- VMEM budget (per-generation; never request all of v7x's 64 MiB). ----
    try:
        vmem_cap = int(pltpu.get_tpu_info().vmem_capacity_bytes)
    except Exception:
        vmem_cap = 64 * 1024 * 1024            # conservative fallback (v7x per-TC)
    vmem_budget = max(32 * 1024 * 1024, vmem_cap - 16 * 1024 * 1024)

    in_b = jnp.dtype(query.dtype).itemsize
    cd_b = compute_dtype.itemsize
    mk_b = mask_dtype.itemsize
    at_b = attn_dtype.itemsize if return_attn else 0

    def _resident_bytes(g):
        gdh = g * Dh
        qkv = 3 * 2 * T * E * in_b                        # double-buffered q/k/v blocks
        wgt = 3 * 2 * E * gdh * cd_b                      # double-buffered weight blocks
        msk = 2 * g * T * T * mk_b                        # mask / softmax(mask) blocks
        outb = 2 * T * gdh * jnp.dtype(out_dtype).itemsize
        attb = 2 * g * T * T * at_b
        live = 4 * g * T * T * 4 + 4 * T * gdh * 4 + 3 * T * E * cd_b   # in-kernel f32 temps
        return qkv + wgt + msk + outb + attb + live

    # ---- Head-group size: lane width G*Dh must be a multiple of 128 (or == E),
    #      and the per-step resident set must fit the VMEM budget. ----
    if head_group_size is None:
        divisors = sorted((g for g in range(1, H + 1) if H % g == 0), reverse=True)
        aligned = [g for g in divisors if (g * Dh == E) or ((g * Dh) % 128 == 0)]
        G = aligned[-1]                      # smallest aligned as fallback (g=H always aligned)
        for g in aligned:                    # prefer the largest that fits
            if _resident_bytes(g) + (8 << 20) <= vmem_budget:
                G = g
                break
    else:
        G = head_group_size
        assert H % G == 0 and ((G * Dh == E) or ((G * Dh) % 128 == 0))
    HG = H // G

    vmem_limit = int(min(vmem_budget, max(16 * 1024 * 1024, 2 * _resident_bytes(G))))

    # ---- One-time host-side prep (q/k/v-independent). ----
    # nn.Linear computes x @ W^T; pre-transpose and group per head -> (HG, E, G*Dh).
    def grouped_wt(w, pre_scale=1.0):
        wt = jnp.asarray(w, jnp.float32).T * pre_scale               # (E_in, E_out)
        return wt.reshape(E, HG, G * Dh).transpose(1, 0, 2).astype(compute_dtype)

    wq_g = grouped_wt(wq, scale)           # fold E**-0.5 into Wq
    wk_g = grouped_wt(wk)
    wv_g = grouped_wt(wv)

    mask4 = attn_mask.reshape(B, H, T, T).astype(jnp.float32)
    if where_to_add_relpos == 'after_gating':
        # Position softmax is independent of q/k/v: compute once in the wrapper.
        mask4 = jax.nn.softmax(mask4, axis=-1)
    mask4 = mask4.astype(mask_dtype)

    gate = jax.nn.sigmoid(jnp.asarray(gating, jnp.float32)).reshape(HG, G, 1, 1)

    kernel = functools.partial(
        _attn_group_kernel,
        group_size=G, head_dim=Dh,
        where_to_add_relpos=where_to_add_relpos,
        compute_dtype=compute_dtype,
        approx_recip=(compute_dtype != f32))

    out_shapes = [jax.ShapeDtypeStruct((B, T, E), out_dtype)]
    out_specs = [pl.BlockSpec((1, T, G * Dh), lambda b, hg: (b, 0, hg))]
    if return_attn:
        out_shapes.append(jax.ShapeDtypeStruct((B, H, T, T), attn_dtype))
        out_specs.append(pl.BlockSpec((1, G, T, T), lambda b, hg: (b, hg, 0, 0)))

    grid_spec = pltpu.PrefetchScalarGridSpec(
        num_scalar_prefetch=0,
        grid=(B, HG),
        in_specs=[
            pl.BlockSpec((1, G, 1, 1), lambda b, hg: (hg, 0, 0, 0)),   # sigmoid(gating) group
            pl.BlockSpec((1, T, E), lambda b, hg: (b, 0, 0)),          # query
            pl.BlockSpec((1, T, E), lambda b, hg: (b, 0, 0)),          # key
            pl.BlockSpec((1, T, E), lambda b, hg: (b, 0, 0)),          # value
            pl.BlockSpec((1, G, T, T), lambda b, hg: (b, hg, 0, 0)),   # mask / softmax(mask)
            pl.BlockSpec((1, E, G * Dh), lambda b, hg: (hg, 0, 0)),    # Wq^T * scale group
            pl.BlockSpec((1, E, G * Dh), lambda b, hg: (hg, 0, 0)),    # Wk^T group
            pl.BlockSpec((1, E, G * Dh), lambda b, hg: (hg, 0, 0)),    # Wv^T group
        ],
        out_specs=tuple(out_specs),
    )

    results = pl.pallas_call(
        kernel,
        out_shape=tuple(out_shapes),
        grid_spec=grid_spec,
        compiler_params=pltpu.CompilerParams(
            dimension_semantics=("parallel", "parallel"),
            vmem_limit_bytes=vmem_limit),
    )(gate, query, key, value, mask4, wq_g, wk_g, wv_g)

    out = results[0]                               # (B, T, E) written directly — no transpose pass
    attn = results[1] if return_attn else None
    return out, attn


def reference(query, key, value, attn_mask, wq, wk, wv, gating, num_heads,
              where_to_add_relpos='after_gating'):
    """Pure-JAX f32 transcription of the PyTorch forward (conv_projection=False)."""
    B, T, E = query.shape
    Dh = E // num_heads
    scale = float(E) ** (-0.5)
    q = (query @ wq.T).reshape(B, T, num_heads, Dh).transpose(0, 2, 1, 3)   # b h t d
    k = (key @ wk.T).reshape(B, T, num_heads, Dh).transpose(0, 2, 3, 1)     # b h d t
    v = (value @ wv.T).reshape(B, T, num_heads, Dh).transpose(0, 2, 1, 3)   # b h t d
    attn = jnp.einsum('bhtd,bhds->bhts', q, k) * scale
    m = attn_mask.reshape(B, num_heads, T, T)
    if where_to_add_relpos == 'before':
        attn = attn + m
    attn = jax.nn.softmax(attn, axis=-1)
    if where_to_add_relpos == 'after':
        attn = attn + m
    elif where_to_add_relpos == 'after_gating':
        g = jax.nn.sigmoid(gating).reshape(1, num_heads, 1, 1)
        attn = (1.0 - g) * attn + g * jax.nn.softmax(m, axis=-1)
        attn = attn / attn.sum(axis=-1, keepdims=True)
    out = jnp.einsum('bhts,bhsd->bhtd', attn, v).transpose(0, 2, 1, 3).reshape(B, T, E)
    return out, attn


if __name__ == "__main__":
    B, T, E, H = 2, 8, 32, 4   # batch, seq_len, emb_size, num_heads

    key0 = jax.random.PRNGKey(0)
    kq, kk, kv, km = jax.random.split(key0, 4)
    query = jax.random.normal(kq, (B, T, E), dtype=jnp.float32)
    keyx = jax.random.normal(kk, (B, T, E), dtype=jnp.float32)
    value = jax.random.normal(kv, (B, T, E), dtype=jnp.float32)
    attn_mask = jax.random.normal(km, (B * H, T, T), dtype=jnp.float32)

    # conv_projection=False __init__: Linear weights copy torch.eye(emb_size)
    wq = jnp.eye(E, dtype=jnp.float32)
    wk = jnp.eye(E, dtype=jnp.float32)
    wv = jnp.eye(E, dtype=jnp.float32)
    # gating_param = cat([-ones(H//2), ones(H//2)])
    gating = jnp.concatenate([-jnp.ones((H // 2,), jnp.float32),
                              jnp.ones((H // 2,), jnp.float32)])

    # --- f32 compute path: all relpos modes, tight tolerance -------------------
    for mode in ('before', 'after', 'after_gating'):
        out, attn = attention_rel_scl(query, keyx, value, attn_mask,
                                      wq, wk, wv, gating, H,
                                      where_to_add_relpos=mode,
                                      compute_dtype=jnp.float32)
        jax.block_until_ready((out, attn))
        out_r, attn_r = reference(query, keyx, value, attn_mask,
                                  wq, wk, wv, gating, H,
                                  where_to_add_relpos=mode)
        assert out.shape == (B, T, E) and attn.shape == (B, H, T, T)
        assert jnp.allclose(out, out_r, atol=1e-3, rtol=1e-3), mode
        assert jnp.allclose(attn, attn_r, atol=1e-3, rtol=1e-3), mode

    # --- bf16 matmul/mask path (v6e/v7x fast path), f32 accumulation ------------
    out_bf, attn_bf = attention_rel_scl(query, keyx, value, attn_mask,
                                        wq, wk, wv, gating, H,
                                        where_to_add_relpos='after_gating')
    jax.block_until_ready((out_bf, attn_bf))
    out_r, attn_r = reference(query, keyx, value, attn_mask,
                              wq, wk, wv, gating, H,
                              where_to_add_relpos='after_gating')
    assert jnp.allclose(out_bf, out_r, atol=5e-2, rtol=5e-2)
    assert jnp.allclose(attn_bf, attn_r, atol=5e-2, rtol=5e-2)

    # --- attn-output-optional fast path -----------------------------------------
    out_only, attn_none = attention_rel_scl(query, keyx, value, attn_mask,
                                            wq, wk, wv, gating, H,
                                            where_to_add_relpos='after_gating',
                                            compute_dtype=jnp.float32,
                                            return_attn=False)
    jax.block_until_ready(out_only)
    assert attn_none is None
    assert jnp.allclose(out_only, out_r, atol=1e-3, rtol=1e-3)

    print("KERNEL_OK")
</pallas_src>

<mosaic_0001>
module attributes {stable_mosaic.version = 11 : i64} {
  func.func @_attn_group_kernel(%arg0: i32, %arg1: i32, %arg2: memref<1x4x1x1xf32, #tpu.memory_space<vmem>>, %arg3: memref<1x8x32xf32, #tpu.memory_space<vmem>>, %arg4: memref<1x8x32xf32, #tpu.memory_space<vmem>>, %arg5: memref<1x8x32xf32, #tpu.memory_space<vmem>>, %arg6: memref<1x4x8x8xf32, #tpu.memory_space<vmem>>, %arg7: memref<1x32x32xf32, #tpu.memory_space<vmem>>, %arg8: memref<1x32x32xf32, #tpu.memory_space<vmem>>, %arg9: memref<1x32x32xf32, #tpu.memory_space<vmem>>, %arg10: memref<1x8x32xf32, #tpu.memory_space<vmem>>, %arg11: memref<1x4x8x8xf32, #tpu.memory_space<vmem>>) attributes {dimension_semantics = [#tpu.dimension_semantics<parallel>, #tpu.dimension_semantics<parallel>], iteration_bounds = array<i64: 2, 1>, scalar_prefetch = 0 : i64, scratch_operands = 0 : i64, tpu.core_type = #tpu.core_type<tc>, window_params = [{transform_indices = @transform_0, window_bounds = array<i64: 1, 4, 1, 1>}, {transform_indices = @transform_1, window_bounds = array<i64: 1, 8, 32>}, {transform_indices = @transform_2, window_bounds = array<i64: 1, 8, 32>}, {transform_indices = @transform_3, window_bounds = array<i64: 1, 8, 32>}, {transform_indices = @transform_4, window_bounds = array<i64: 1, 4, 8, 8>}, {transform_indices = @transform_5, window_bounds = array<i64: 1, 32, 32>}, {transform_indices = @transform_6, window_bounds = array<i64: 1, 32, 32>}, {transform_indices = @transform_7, window_bounds = array<i64: 1, 32, 32>}, {transform_indices = @transform_8, window_bounds = array<i64: 1, 8, 32>}, {transform_indices = @transform_9, window_bounds = array<i64: 1, 4, 8, 8>}]} {
    %c0 = arith.constant 0 : index
    %c0_0 = arith.constant 0 : index
    %c0_1 = arith.constant 0 : index
    %0 = vector.load %arg3[%c0, %c0_0, %c0_1] : memref<1x8x32xf32, #tpu.memory_space<vmem>>, vector<1x8x32xf32>
    %1 = vector.shape_cast %0 : vector<1x8x32xf32> to vector<8x32xf32>
    %c0_2 = arith.constant 0 : index
    %c0_3 = arith.constant 0 : index
    %c0_4 = arith.constant 0 : index
    %2 = vector.load %arg4[%c0_2, %c0_3, %c0_4] : memref<1x8x32xf32, #tpu.memory_space<vmem>>, vector<1x8x32xf32>
    %3 = vector.shape_cast %2 : vector<1x8x32xf32> to vector<8x32xf32>
    %c0_5 = arith.constant 0 : index
    %c0_6 = arith.constant 0 : index
    %c0_7 = arith.constant 0 : index
    %4 = vector.load %arg5[%c0_5, %c0_6, %c0_7] : memref<1x8x32xf32, #tpu.memory_space<vmem>>, vector<1x8x32xf32>
    %5 = vector.shape_cast %4 : vector<1x8x32xf32> to vector<8x32xf32>
    %c0_8 = arith.constant 0 : index
    %c0_9 = arith.constant 0 : index
    %c0_10 = arith.constant 0 : index
    %6 = vector.load %arg7[%c0_8, %c0_9, %c0_10] : memref<1x32x32xf32, #tpu.memory_space<vmem>>, vector<1x32x32xf32>
    %7 = vector.shape_cast %6 : vector<1x32x32xf32> to vector<32x32xf32>
    %cst = arith.constant dense<0.000000e+00> : vector<8x32xf32>
    %8 = tpu.matmul %1, %7, %cst {dimension_numbers = #tpu.dot_dimension_numbers<[1], [0], [0], [1], [0, 0, 1, 1], [], []>} : vector<8x32xf32>, vector<32x32xf32>, vector<8x32xf32> -> vector<8x32xf32>
    %c0_11 = arith.constant 0 : index
    %c0_12 = arith.constant 0 : index
    %c0_13 = arith.constant 0 : index
    %9 = vector.load %arg8[%c0_11, %c0_12, %c0_13] : memref<1x32x32xf32, #tpu.memory_space<vmem>>, vector<1x32x32xf32>
    %10 = vector.shape_cast %9 : vector<1x32x32xf32> to vector<32x32xf32>
    %cst_14 = arith.constant dense<0.000000e+00> : vector<8x32xf32>
    %11 = tpu.matmul %3, %10, %cst_14 {dimension_numbers = #tpu.dot_dimension_numbers<[1], [0], [0], [1], [0, 0, 1, 1], [], []>} : vector<8x32xf32>, vector<32x32xf32>, vector<8x32xf32> -> vector<8x32xf32>
    %c0_15 = arith.constant 0 : index
    %c0_16 = arith.constant 0 : index
    %c0_17 = arith.constant 0 : index
    %12 = vector.load %arg9[%c0_15, %c0_16, %c0_17] : memref<1x32x32xf32, #tpu.memory_space<vmem>>, vector<1x32x32xf32>
    %13 = vector.shape_cast %12 : vector<1x32x32xf32> to vector<32x32xf32>
    %cst_18 = arith.constant dense<0.000000e+00> : vector<8x32xf32>
    %14 = tpu.matmul %5, %13, %cst_18 {dimension_numbers = #tpu.dot_dimension_numbers<[1], [0], [0], [1], [0, 0, 1, 1], [], []>} : vector<8x32xf32>, vector<32x32xf32>, vector<8x32xf32> -> vector<8x32xf32>
    %15 = vector.shape_cast %8 : vector<8x32xf32> to vector<8x4x8xf32>
    %16 = vector.shape_cast %11 : vector<8x32xf32> to vector<8x4x8xf32>
    %17 = vector.shape_cast %14 : vector<8x32xf32> to vector<8x4x8xf32>
    "tpu.trace_start"() <{level = 10 : i32, message = "tgd,sgd->gts"}> : () -> ()
    %cst_19 = arith.constant dense<0.000000e+00> : vector<4x8x8xf32>
    %18 = tpu.matmul %15, %16, %cst_19 {dimension_numbers = #tpu.dot_dimension_numbers<[2], [2], [0], [0], [0, 1, 0, 0, 1, 0], [1], [1]>} : vector<8x4x8xf32>, vector<8x4x8xf32>, vector<4x8x8xf32> -> vector<4x8x8xf32>
    "tpu.trace_stop"() : () -> ()
    %c0_20 = arith.constant 0 : index
    %c0_21 = arith.constant 0 : index
    %c0_22 = arith.constant 0 : index
    %c0_23 = arith.constant 0 : index
    %19 = vector.load %arg6[%c0_20, %c0_21, %c0_22, %c0_23] : memref<1x4x8x8xf32, #tpu.memory_space<vmem>>, vector<1x4x8x8xf32>
    %20 = vector.shape_cast %19 : vector<1x4x8x8xf32> to vector<4x8x8xf32>
    %21 = arith.addf %18, %20 : vector<4x8x8xf32>
    %cst_24 = arith.constant dense<0xFF800000> : vector<4x8xf32>
    %22 = vector.multi_reduction <maximumf>, %21, %cst_24 [2] : vector<4x8x8xf32> to vector<4x8xf32>
    %23 = vector.shape_cast %22 : vector<4x8xf32> to vector<4x8x1xf32>
    %24 = vector.broadcast %23 : vector<4x8x1xf32> to vector<4x8x8xf32>
    %25 = arith.subf %21, %24 : vector<4x8x8xf32>
    %26 = math.exp %25 : vector<4x8x8xf32>
    %cst_25 = arith.constant dense<0.000000e+00> : vector<4x8xf32>
    %27 = vector.multi_reduction <add>, %26, %cst_25 [2] : vector<4x8x8xf32> to vector<4x8xf32>
    %28 = vector.shape_cast %27 : vector<4x8xf32> to vector<4x8x1xf32>
    %29 = tpu.reciprocal %28 : vector<4x8x1xf32> -> vector<4x8x1xf32>
    %30 = vector.broadcast %29 : vector<4x8x1xf32> to vector<4x8x8xf32>
    %31 = arith.mulf %26, %30 : vector<4x8x8xf32>
    "tpu.trace_start"() <{level = 10 : i32, message = "gts,sgd->tgd"}> : () -> ()
    %cst_26 = arith.constant dense<0.000000e+00> : vector<4x8x8xf32>
    %32 = tpu.matmul %17, %31, %cst_26 {dimension_numbers = #tpu.dot_dimension_numbers<[0], [2], [2], [1], [0, 1, 0, 2, 1, 1], [1], [0]>} : vector<8x4x8xf32>, vector<4x8x8xf32>, vector<4x8x8xf32> -> vector<4x8x8xf32>
    %33 = tpu.transpose %32, [2, 0, 1] : vector<4x8x8xf32> -> vector<8x4x8xf32>
    "tpu.trace_stop"() : () -> ()
    %34 = vector.shape_cast %33 : vector<8x4x8xf32> to vector<8x32xf32>
    %c0_27 = arith.constant 0 : index
    %c0_28 = arith.constant 0 : index
    %c0_29 = arith.constant 0 : index
    %35 = vector.load %arg10[%c0_27, %c0_28, %c0_29] : memref<1x8x32xf32, #tpu.memory_space<vmem>>, vector<1x8x32xf32>
    %36 = vector.shape_cast %35 : vector<1x8x32xf32> to vector<8x32xf32>
    %37 = vector.shape_cast %34 : vector<8x32xf32> to vector<1x8x32xf32>
    tpu.vector_store %arg10[%c0_27, %c0_28, %c0_29], %37 {strides = array<i32>} : memref<1x8x32xf32, #tpu.memory_space<vmem>>, vector<1x8x32xf32>,
    %c0_30 = arith.constant 0 : index
    %c0_31 = arith.constant 0 : index
    %c0_32 = arith.constant 0 : index
    %c0_33 = arith.constant 0 : index
    %38 = vector.load %arg11[%c0_30, %c0_31, %c0_32, %c0_33] : memref<1x4x8x8xf32, #tpu.memory_space<vmem>>, vector<1x4x8x8xf32>
    %39 = vector.shape_cast %38 : vector<1x4x8x8xf32> to vector<4x8x8xf32>
    %40 = vector.shape_cast %31 : vector<4x8x8xf32> to vector<1x4x8x8xf32>
    tpu.vector_store %arg11[%c0_30, %c0_31, %c0_32, %c0_33], %40 {strides = array<i32>} : memref<1x4x8x8xf32, #tpu.memory_space<vmem>>, vector<1x4x8x8xf32>,
    return
  }
  func.func @transform_0(%arg0: i32, %arg1: i32) -> (i32, i32, i32, i32) {
    %c0_i32 = arith.constant 0 : i32
    %c0_i32_0 = arith.constant 0 : i32
    %c0_i32_1 = arith.constant 0 : i32
    %c0_i32_2 = arith.constant 0 : i32
    return %arg1, %c0_i32, %c0_i32_0, %c0_i32_1 : i32, i32, i32, i32
  }
  func.func @transform_1(%arg0: i32, %arg1: i32) -> (i32, i32, i32) {
    %c0_i32 = arith.constant 0 : i32
    %c0_i32_0 = arith.constant 0 : i32
    %c0_i32_1 = arith.constant 0 : i32
    return %arg0, %c0_i32, %c0_i32_0 : i32, i32, i32
  }
  func.func @transform_2(%arg0: i32, %arg1: i32) -> (i32, i32, i32) {
    %c0_i32 = arith.constant 0 : i32
    %c0_i32_0 = arith.constant 0 : i32
    %c0_i32_1 = arith.constant 0 : i32
    return %arg0, %c0_i32, %c0_i32_0 : i32, i32, i32
  }
  func.func @transform_3(%arg0: i32, %arg1: i32) -> (i32, i32, i32) {
    %c0_i32 = arith.constant 0 : i32
    %c0_i32_0 = arith.constant 0 : i32
    %c0_i32_1 = arith.constant 0 : i32
    return %arg0, %c0_i32, %c0_i32_0 : i32, i32, i32
  }
  func.func @transform_4(%arg0: i32, %arg1: i32) -> (i32, i32, i32, i32) {
    %c0_i32 = arith.constant 0 : i32
    %c0_i32_0 = arith.constant 0 : i32
    %c0_i32_1 = arith.constant 0 : i32
    return %arg0, %arg1, %c0_i32, %c0_i32_0 : i32, i32, i32, i32
  }
  func.func @transform_5(%arg0: i32, %arg1: i32) -> (i32, i32, i32) {
    %c0_i32 = arith.constant 0 : i32
    %c0_i32_0 = arith.constant 0 : i32
    %c0_i32_1 = arith.constant 0 : i32
    return %arg1, %c0_i32, %c0_i32_0 : i32, i32, i32
  }
  func.func @transform_6(%arg0: i32, %arg1: i32) -> (i32, i32, i32) {
    %c0_i32 = arith.constant 0 : i32
    %c0_i32_0 = arith.constant 0 : i32
    %c0_i32_1 = arith.constant 0 : i32
    return %arg1, %c0_i32, %c0_i32_0 : i32, i32, i32
  }
  func.func @transform_7(%arg0: i32, %arg1: i32) -> (i32, i32, i32) {
    %c0_i32 = arith.constant 0 : i32
    %c0_i32_0 = arith.constant 0 : i32
    %c0_i32_1 = arith.constant 0 : i32
    return %arg1, %c0_i32, %c0_i32_0 : i32, i32, i32
  }
  func.func @transform_8(%arg0: i32, %arg1: i32) -> (i32, i32, i32) {
    %c0_i32 = arith.constant 0 : i32
    %c0_i32_0 = arith.constant 0 : i32
    return %arg0, %c0_i32, %arg1 : i32, i32, i32
  }
  func.func @transform_9(%arg0: i32, %arg1: i32) -> (i32, i32, i32, i32) {
    %c0_i32 = arith.constant 0 : i32
    %c0_i32_0 = arith.constant 0 : i32
    %c0_i32_1 = arith.constant 0 : i32
    return %arg0, %arg1, %c0_i32, %c0_i32_0 : i32, i32, i32, i32
  }
}

</mosaic_0001>

<bundles_post_ra>
// kernel: tpu_custom_call.1
= control target key start
LH: loop header
LB: loop body
LE: loop exit
PB: predicated region body
PF: predicated region fallthrough
CT: control target
= control target key end

     0   :  { %s2743_s0 = inlined_call_operand.vmem [shape: f32[1,4,1,1], index: 0, kind: input, shape index: {}]   ;;  %s2744_s1 = inlined_call_operand.hbm [shape: f32[2,8,32], index: 1, kind: input, shape index: {}]   ;;  %s2745_s2 = inlined_call_operand.hbm [shape: f32[2,8,32], index: 2, kind: input, shape index: {}]   ;;  %s2746_s3 = inlined_call_operand.hbm [shape: f32[2,8,32], index: 3, kind: input, shape index: {}]   ;;  %s2747_s4 = inlined_call_operand.hbm [shape: f32[2,4,8,8], index: 4, kind: input, shape index: {}]   ;;  %s2748_s5 = inlined_call_operand.hbm [shape: f32[1,32,32], index: 5, kind: input, shape index: {}]   ;;  %s2749_s6 = inlined_call_operand.hbm [shape: f32[1,32,32], index: 6, kind: input, shape index: {}]   ;;  %s2750_s7 = inlined_call_operand.hbm [shape: f32[1,32,32], index: 7, kind: input, shape index: {}]   ;;  %s2751_s8 = inlined_call_operand.hbm [shape: f32[2,8,32], index: 8, kind: output, shape index: {0}]   ;;  %s2752_s9 = inlined_call_operand.hbm [shape: f32[2,4,8,8], index: 9, kind: output, shape index: {1}]  }
   0x1   :  { %2766 = sst [smem:[#allocation30_spill]] %s2745_s2 }
   0x2   :  { %2767 = sst [smem:[#allocation31_spill]] %s2748_s5 }
   0x3   :  { %2768 = sst [smem:[#allocation32_spill]] %s2749_s6 }
   0x4   :  { %2769 = sst [smem:[#allocation33_spill]] %s2750_s7 }
   0x5   :  { %2770 = sst [smem:[#allocation34_spill]] %s2751_s8 }
   0x6   :  { %2771 = sst [smem:[#allocation35_spill]] %s2752_s9 }
   0x7   :  { %15 = vsyncpa [#allocation3], 0 }
   0x8   :  { %17 = vsyncpa [#allocation3 + $0x1], 0 }
   0x9   :  { %18 = vsyncpa [#allocation6], 0 }
   0xa   :  { %20 = vsyncpa [#allocation6 + $0x1], 0 }
   0xb   :  { %21 = vsyncpa [#allocation9], 0 }
   0xc   :  { %23 = vsyncpa [#allocation9 + $0x1], 0 }
   0xd   :  { %24 = vsyncpa [#allocation12], 0 }
   0xe   :  { %25 = vsyncpa [#allocation4], 0 }
   0xf   :  { %27 = vsyncpa [#allocation4 + $0x1], 0 }
  0x10   :  { %28 = vsyncpa [#allocation16], 0 }
  0x11   :  { %30 = vsyncpa [#allocation16 + $0x1], 0  ;;  %s2391_s29 = smov 0   ;;  %s2393_s30 = smov 0  }
  0x12   :  { %s2395_s10 = smov 0   ;;  %s2397_s11 = smov 0  }
  0x13   :  { %s2399_s12 = smov 0   ;;  %s2401_s13 = smov 0  }
  0x14 LB: > { %2772 = sst [smem:[#allocation24_spill]] %s2305_s29  ;;  %s2422_s14 = sadd.s32 4294967295, %s2325_s13   ;;  %s2325_s13 = sphi %s2401_s13, %s36_s13   ;;  %s2321_s12 = sphi %s2399_s12, %s2802_s12   ;;  %s2317_s11 = sphi %s2397_s11, %s2801_s11   ;;  %s2313_s10 = sphi %s2395_s10, %s2797_s10   ;;  %s2309_s30 = sphi %s2393_s30, %s2800_s30   ;;  %s2305_s29 = sphi %s2391_s29, %s2799_s29  }
  0x15   : > { %2773 = sst [smem:[#allocation25_spill]] %s2313_s10  ;;  %s1787_s15 = sadd.s32 4294967294, %s2325_s13  }
  0x16   : > { %p94_p0 = scmp.ne.s32.totalorder %s2309_s30, %s2305_s29  ;;  %p95_p1 = scmp.eq.s32.totalorder %s2422_s14, 0 }
  0x17   : > { %p278_p2 = scmp.eq.s32.totalorder %s2422_s14, 1  ;;  %p284_p3 = scmp.eq.s32.totalorder %s1787_s15, 1 }
  0x18   : > { %p2431_p4 = por %p95_p1, %p94_p0  ;;  %p1788_p5 = scmp.ge.s32.totalorder %s2325_s13, 1 }
  0x19   : > { %p2436_p6 = por %p284_p3, %p94_p0  ;;  %p319_p7 = scmp.lt.s32.totalorder %s2325_s13, 3 }
  0x1a   : > { %s2777_s5 = sld [smem:[#allocation31_spill]]  ;;  %s2327_s22 = smov [#allocation10]  }
  0x1b   : > { %s2775_s17 = scalar_select %p2436_p6, 1, 0 }
  0x1c   : > { %p2444_p8 = pnand %p1788_p5, %p319_p7  ;;  %s342_s23 = sshll.u32 %s2327_s22, 4  ;;  %s343_s23 = int_to_ptr.vmem [resolvable:$true] %s342_s23 }
  0x1d   : > { %2776 = sst [smem:[#allocation26_spill]] %s2775_s17  ;;  %p1793_p11 = scmp.ge.s32.totalorder %s2325_s13, 2 }
  0x1e   : > { %p1861_p9 = pneg %p2444_p8  ;;  %s2780_s6 = sld [smem:[#allocation32_spill]] }
  0x1f   : > { %s2753_s27 = smov 128   ;;  %s2755_s28 = smov 8  }
  0x20   : > { %s340_s20 = sshll.u32 %s2777_s5, 4  ;;  %p2452_p10 = pnand %p1861_p9, %p95_p1  ;;  %s341_s20 = int_to_ptr.hbm [resolvable:$true] %s340_s20 }
  0x21   : > { %s2330_s15 = smov [#allocation11]   ;;  %s48_s19 = sadd.s32 1, %s2321_s12 }
  0x22   : > { %1864 = dma.hbm_to_vmem [thread:$0]  (!%p2452_p10), %s341_s20, 512, %s343_s23, [#allocation9], %s2753_s27, %s2753_s27, %s2755_s28  }
  0x23   : > { %s359_s18 = sshll.u32 %s2330_s15, 4  ;;  %s81_s22 = sadd.s32 1, %s2313_s10  ;;  %s360_s18 = int_to_ptr.vmem [resolvable:$true] %s359_s18 }
  0x24   : > { %s357_s26 = sshll.u32 %s2780_s6, 4  ;;  %p50_p12 = scmp.ge.s32.totalorder %s48_s19, 2  ;;  %s358_s26 = int_to_ptr.hbm [resolvable:$true] %s357_s26 }
  0x25   : > { %1867 = dma.hbm_to_vmem [thread:$0]  (!%p2452_p10), %s358_s26, 512, %s360_s18, [#allocation12], %s2753_s27, %s2753_s27, %s2755_s28  }
  0x26   : > { %p88_p13 = scmp.ne.s32.totalorder %s2313_s10, %s2309_s30  ;;  %p89_p0 = scmp.eq.s32.totalorder %s2325_s13, 0 }
  0x27   : > { %p1894_p3 = scmp.lt.s32.totalorder %s2325_s13, 2  ;;  %s2804_s19 = smov (%p50_p12, %s48_s19), 0 }
  0x28   : > { %2781 = sst [smem:[#allocation27_spill]] %s2804_s19  ;;  %p90_p5 = por %p89_p0, %p88_p13 }
  0x29   : > { %p2480_p7 = por %p278_p2, %p88_p13  ;;  %s78_s23 = ssub.s32 %s2321_s12, %s2804_s19 }
  0x2a   : > { %s2487_s0 = sand.u32 1, %s2313_s10   ;;  %p79_p9 = scmp.eq.s32.totalorder %s78_s23, 0 }
  0x2b   : > { %s2782_s20 = scalar_select %p2480_p7, 1, 0 }
  0x2c   : > { %s2490_s25 = sshll.u32 %s2487_s0, 3  ;;  %s2493_s26 = sshll.u32 %s2321_s12, 3 }
  0x2d   : > { %2783 = sst [smem:[#allocation28_spill]] %s2782_s20  ;;  %p2495_p12 = pnand %p1894_p3, %p90_p5 }
  0x2e   : > { %s2500_s18 = scalar_select %p79_p9, %s2313_s10, %s81_s22  }
  0x2f   : > { %s2762_s27 = sand.u32 1, %s2325_s13   ;;  %s2786_s2 = sld [smem:[#allocation30_spill]] }
  0x30   : > { %2785 = sst [smem:[#allocation29_spill]] %s2500_s18  ;;  %s413_s23 = scalar_lea.vmem [#allocation5], %s2490_s25 }
  0x31   : > { %s421_s19 = sshll.u32 %s413_s23, 4  ;;  %s410_s29 = scalar_lea.sflag [#allocation6], %s2762_s27  ;;  %s422_s19 = int_to_ptr.vmem [resolvable:$true] %s421_s19 }
  0x32   : > { %s1800_s22 = sshll.u32 %s2487_s0, 5  ;;  %s2787_s7 = sld [smem:[#allocation33_spill]] }
  0x33   : > { %s451_s28 = scalar_lea.vmem [#allocation8], %s1800_s22  ;;  %s2788_s8 = smov 8  }
  0x34   : > { %s461_s23 = sshll.u32 %s451_s28, 4  ;;  %s2789_s27 = smov 128   ;;  %s462_s23 = int_to_ptr.vmem [resolvable:$true] %s461_s23 }
  0x35   : > { %s417_s6 = scalar_lea.hbm %s2786_s2, %s2493_s26  ;;  %s398_s10 = scalar_lea.hbm %s2744_s1, %s2493_s26 }
  0x36   : > { %s419_s17 = sshll.u32 %s417_s6, 4  ;;  %s2331_s6 = smov [#allocation13]   ;;  %s420_s17 = int_to_ptr.hbm [resolvable:$true] %s419_s17 }
  0x37   : > { %1877 = dma.hbm_to_vmem [thread:$0]  (!%p2495_p12), %s420_s17, 128, %s422_s19, %s410_s29  }
  0x38   : > { %s374_s5 = sshll.u32 %s2787_s7, 4  ;;  %s376_s2 = sshll.u32 %s2331_s6, 4  ;;  %s375_s5 = int_to_ptr.hbm [resolvable:$true] %s374_s5  ;;  %s377_s2 = int_to_ptr.vmem [resolvable:$true] %s376_s2 }
  0x39   : > { %1870 = dma.hbm_to_vmem [thread:$0]  (!%p2452_p10), %s375_s5, 512, %s377_s2, [#allocation12], %s2789_s27, %s2789_s27, %s2788_s8  }
  0x3a   : > { %s400_s18 = sshll.u32 %s398_s10, 4  ;;  %s394_s7 = scalar_lea.vmem [#allocation2], %s2490_s25  ;;  %s401_s18 = int_to_ptr.hbm [resolvable:$true] %s400_s18 }
  0x3b   : > { %s402_s20 = sshll.u32 %s394_s7, 4  ;;  %s391_s22 = scalar_lea.sflag [#allocation3], %s2487_s0  ;;  %s403_s20 = int_to_ptr.vmem [resolvable:$true] %s402_s20 }
  0x3c   : > { %1874 = dma.hbm_to_vmem [thread:$0]  (!%p2495_p12), %s401_s18, 128, %s403_s20, %s391_s22  }
  0x3d   : > { %s436_s6 = scalar_lea.hbm %s2746_s3, %s2493_s26  ;;  %s432_s5 = scalar_lea.vmem [#allocation7], %s2490_s25 }
  0x3e   : > { %s438_s2 = sshll.u32 %s436_s6, 4  ;;  %s440_s9 = sshll.u32 %s432_s5, 4  ;;  %s439_s2 = int_to_ptr.hbm [resolvable:$true] %s438_s2  ;;  %s441_s9 = int_to_ptr.vmem [resolvable:$true] %s440_s9 }
  0x3f   : > { %1880 = dma.hbm_to_vmem [thread:$0]  (!%p2495_p12), %s439_s2, 128, %s441_s9, %s410_s29  }
  0x40   : > { %s1835_s17 = sshll.u32 %s2321_s12, 5  ;;  %s2790_s20 = sand.u32 1, %s2325_s13  }
  0x41   : > { %s458_s10 = scalar_lea.hbm %s2747_s4, %s1835_s17  ;;  %s448_s18 = scalar_lea.sflag [#allocation9], %s2790_s20 }
  0x42   : > { %s459_s0 = sshll.u32 %s458_s10, 4  ;;  %473 = sbr.rel (%p2444_p8) target bundleno = 1485 (0x5cd), region = 52  ;;  %s460_s0 = int_to_ptr.hbm [resolvable:$true] %s459_s0 }
  0x43   : > { %1883 = dma.hbm_to_vmem [thread:$0]  (!%p2495_p12), %s460_s0, 512, %s462_s23, %s448_s18, %s2789_s27, %s2789_s27, %s2788_s8  }
  0x44   : > { %s2550_s9 = sand.u32 (!%p2444_p8), 1, %s2309_s30  }
  0x45   : > { %s2553_s29 = sshll.u32 (!%p2444_p8), %s2550_s9, 3  ;;  %s476_s25 = scalar_lea.sflag (!%p2444_p8), [#allocation3], %s2550_s9 }
  0x46   : > { %s479_s26 = scalar_lea.vmem (!%p2444_p8), [#allocation2], %s2553_s29 }
  0x47   : > { %2276 = dma.done.wait (%p2431_p4), %s476_s25, 128  }
  0x48   : > { %2278 = vsyncadd (%p2431_p4), %s476_s25, 4294967168  ;;  %s485_s8 = sand.u32 1, %s2422_s14   ;;  %s489_s27 = scalar_lea.vmem [#allocation5], %s2553_s29 }
  0x49   : > { %s486_s21 = scalar_lea.sflag [#allocation6], %s485_s8 }
  0x4a   : > { %2280 = dma.done.wait (%p2431_p4), %s486_s21, 256  }
  0x4b   : > { %2282 = vsyncadd (%p2431_p4), %s486_s21, 4294967040  ;;  %s1807_s15 = sshll.u32 %s2550_s9, 5  ;;  %s499_s23 = scalar_lea.vmem [#allocation7], %s2553_s29 }
  0x4c   : > { %s506_s22 = scalar_lea.sflag [#allocation9], %s485_s8  ;;  %s2571_s24 = scalar_lea.vmem [#allocation8], %s1807_s15 }
  0x4d   : > { %2284 = dma.done.wait (%p2431_p4), %s506_s22, 512  }
  0x4e   : > { %2286 = vsyncadd (%p2431_p4), %s506_s22, 4294966784 }
  0x4f   : > { %2288 = dma.done.wait (%p95_p1), [#allocation9], 512  }
  0x50   : > { %2290 = vsyncadd (%p95_p1), [#allocation9], 4294966784 }
  0x51   : > { %2292 = dma.done.wait (%p95_p1), [#allocation12], 1024  }
  0x52   : > { %2294 = vsyncadd (%p95_p1), [#allocation12], 4294966272  ;;  %v624_v0 = vld [vmem:[#allocation11 + $0x18] sm:$0xff]  ;;  %v623_v1 = vld [vmem:[#allocation11 + $0x10] sm:$0xff]  ;;  %vm597_vm0 = vcmask 261120   ;;  %s2332_s14 = smov 104  }
  0x53   : > { %640 = vmatpush.msra.mxu1 %v624_v0  ;;  %v596_v2 = vld [vmem:[#allocation10 + $0x18] sm:$0xff]  ;;  %v622_v3 = vld [vmem:[#allocation11 + $0x8] sm:$0xff]  ;;  %v595_v4 = vld [vmem:[#allocation10 + $0x10] sm:$0xff]  ;;  %s2333_s16 = smov 120   ;;  %s2334_s28 = smov 112   ;;  %vm834_vm1 = vcmask 64512  }
  0x54   : > { %613 = vmatpush.msra.mxu0 %v596_v2  ;;  %v594_v5 = vld [vmem:[#allocation10 + $0x8] sm:$0xff]  ;;  %v621_v6 = vld [vmem:[#allocation11] sm:$0xff]  ;;  %v590_v9 = vld [vmem:[%s479_s26] sm:$0xff]  ;;  %s2629_s6 = scalar_lea.vmem [#allocation15], %s1807_s15  ;;  %s1836_s5 = sshll.u32 %s2317_s11, 5 }
  0x55   : > { %641 = vmatpush.msra.mxu1 %v623_v1  ;;  %v591_v7 = vld [vmem:[%s489_s27] sm:$0xff]  ;;  %v651_v28 = vld [vmem:[#allocation13 + $0x18] sm:$0xff]  ;;  %v650_v29 = vld [vmem:[#allocation13 + $0x10] sm:$0xff]  ;;  %s1547_s2 = sshll.u32 %s2629_s6, 4  ;;  %s2791_s19 = sld [smem:[#allocation35_spill]]  ;;  %s2676_s2 = int_to_ptr.vmem [resolvable:$true] %s1547_s2 }
  0x56   : > { %614 = vmatpush.msra.mxu0 %v595_v4  ;;  %v593_v8 = vld [vmem:[#allocation10] sm:$0xff]  ;;  %667 = vmatpush.msra.mxu2 %v651_v28  ;;  %v649_v30 = vld [vmem:[#allocation13 + $0x8] sm:$0xff]  ;;  %v592_v32 = vld [vmem:[%s499_s23] sm:$0xff]  ;;  %s1518_s18 = scalar_lea.sflag [#allocation16], %s2550_s9 }
  0x57   : > { %642 = vmatpush.msra.mxu1 %v622_v3  ;;  %v702_v24 = vld [vmem:[%s2571_s24] sm:$0xff]  ;;  %v704_v33 = vld [vmem:[%s2571_s24 + $0x10] sm:$0xff]  ;;  %v705_v34 = vld [vmem:[%s2571_s24 + $0x18] sm:$0xff] }
  0x58   : > { %615 = vmatpush.msra.mxu0 %v594_v5  ;;  %668 = vmatpush.msra.mxu2 %v650_v29  ;;  %v648_v31 = vld [vmem:[#allocation13] sm:$0xff]  ;;  %v703_v40 = vld [vmem:[%s2571_s24 + $0x8] sm:$0xff] }
  0x59   : > { %643 = vmatpush.msra.mxu1 %v621_v6 }
  0x5a   : > { %1814 = vmatmul.msk.f32.vlgmr.msra.gmra.mxu1 %vm597_vm0, %v591_v7  ;;  %616 = vmatpush.msra.mxu0 %v593_v8 }
  0x5b   : > { %1813 = vmatmul.msk.f32.vlgmr.msra.gmra.mxu0 %vm597_vm0, %v590_v9  ;;  %669 = vmatpush.msra.mxu2 %v649_v30  ;;  %s1546_s10 = scalar_lea.hbm %s2791_s19, %s1836_s5  ;;  %s2215_s27 = scalar_lea.hbm %s2791_s19, 64 }
  0x5c   : > { %s1549_s20 = sshll.u32 %s1546_s10, 4  ;;  %s1550_s20 = int_to_ptr.hbm [resolvable:$true] %s1549_s20 }
  0x5d   : > { %670 = vmatpush.msra.mxu2 %v648_v31  ;;  %s2209_s25 = sshra.s32 %s1550_s20, 4  ;;  %s2210_s25 = int_to_ptr.hbm [resolvable:$true] %s2209_s25 }
  0x5e   : > { %1815 = vmatmul.msk.f32.vlgmr.msra.gmra.mxu2 %vm597_vm0, %v592_v32  ;;  %s2211_s26 = scalar_lea.hbm %s2210_s25, 32  ;;  %p2216_p8 = scmp.lt.s32.totalorder %s2210_s25, %s2791_s19 }
  0x5f   : > { %p2212_p1 = scmp.ne.s32.totalorder %s2210_s25, %s2211_s26  ;;  %p2217_p10 = scmp.lt.s32.totalorder %s2215_s27, %s2211_s26 }
  0x61   : > { %p2213_p2 = pnand %p2212_p1, %p2480_p7  ;;  %p2218_p13 = por %p2217_p10, %p2216_p8 }
  0x63   : > { %p2214_p4 = pneg %p2213_p2 }
  0x65   : > { %p2219_p0 = pnand %p2218_p13, %p2214_p4 }
  0xd7   : > { %v645_v10 = vpop.f32.mrf.mxu1 }
  0xd8   : > { %689 = vrot.lane.b32.xlu1 %v645_v10, %s2332_s14  ;;  %683 = vrot.lane.b32.xlu0 %v645_v10, %s2333_s16  ;;  %v618_v11 = vpop.f32.mrf.mxu0 }
  0xd9   : > { %678 = vrot.lane.b32.xlu2 %v618_v11, %s2334_s28 }
  0xe0   : > { %686 = vrot.lane.b32.xlu0 %v645_v10, %s2334_s28  ;;  %676 = vrot.lane.b32.xlu1 %v618_v11, %s2333_s16 }
  0xe1   : > { %680 = vrot.lane.b32.xlu2 %v618_v11, %s2332_s14  ;;  %v672_v1 = vpop.f32.mrf.mxu2 }
 0x102   : > { %706 = vxpose.xlu0.b32.start.end [1/1] (short) (narrow) %v645_v10, 8 }
 0x133   : > { %v679_v17 = vpop.permute.xlu2 %678 }
 0x13b   : > { %v681_v18 = vpop.permute.xlu2 %680 }
 0x14a   : > { %v684_v12 = vpop.permute.xlu0 %683  ;;  %v690_v13 = vpop.permute.xlu1 %689 }
 0x14b   : > { %738 = vxpose.xlu1.b32.start.end [1/1] (short) (narrow) %v684_v12, 8 }
 0x152   : > { %v687_v14 = vpop.permute.xlu0 %686  ;;  %v677_v19 = vpop.permute.xlu1 %676 }
 0x153   : > { %v1962_v15 = vpack.i.bf16 %v690_v13, %v687_v14 }
 0x155   : > { %1963 = vxpose.xlu2.b32.start.end [1/1] (short) (narrow) %v1962_v15, 8 }
 0x1a6   : > { %v722_v16 = vpop.trf.xlu0 }
 0x1a7   : > { %852 = vmatpush.msra.mxu3 %v722_v16 }
 0x1a8   : > { %1816 = vmatmul.msk.f32.vlgmr.msra.gmra.mxu3 %vm834_vm1, %v618_v11 }
 0x1ee   : > { %v1964_v20 = vpop.trf.xlu2 }
 0x1ef   : > { %v754_v21 = vpop.trf.xlu1  ;;  %v1965_v22 = vunpack.i.l.bf16 %v1964_v20  ;;  %v1968_v23 = vunpack.i.h.bf16 %v1964_v20 }
 0x1f0   : > { %874 = vmatpush.msrb.mxu3 %v754_v21 }
 0x1f1   : > { %1817 = vmatmul.msk.f32.vlgmr.msrb.gmra.mxu3 %vm834_vm1, %v677_v19  ;;  %896 = vmatpush.msrb.mxu0 %v1965_v22 }
 0x1f2   : > { %918 = vmatpush.msrb.mxu1 %v1968_v23  ;;  %1818 = vmatmul.msk.f32.vlgmr.msrb.gmra.mxu0 %vm834_vm1, %v679_v17 }
 0x1f3   : > { %1819 = vmatmul.msk.f32.vlgmr.msrb.gmra.mxu1 %vm834_vm1, %v681_v18 }
 0x22b   : > { %v854_v25 = vpop.f32.mrf.mxu3 }
 0x22c   : > { %v855_v26 = vadd.f32 %v854_v25, %v702_v24 }
 0x22e   : > { %v923_v27 = vsel %vm834_vm1, %v855_v26, -inf }
 0x22f   : > { %924 = vmax.xlane.f32.xlu0 %v923_v27 }
 0x26f   : > { %v898_v35 = vpop.f32.mrf.mxu0 }
 0x270   : > { %v899_v36 = vadd.f32 %v898_v35, %v704_v33  ;;  %v920_v37 = vpop.f32.mrf.mxu1 }
 0x271   : > { %v921_v38 = vadd.f32 %v920_v37, %v705_v34 }
 0x272   : > { %v929_v39 = vsel %vm834_vm1, %v899_v36, -inf }
 0x273   : > { %930 = vmax.xlane.f32.xlu1 %v929_v39  ;;  %v932_v41 = vsel %vm834_vm1, %v921_v38, -inf }
 0x274   : > { %933 = vmax.xlane.f32.xlu0 %v932_v41  ;;  %v876_v42 = vpop.f32.mrf.mxu3 }
 0x275   : > { %v877_v43 = vadd.f32 %v876_v42, %v703_v40 }
 0x277   : > { %v926_v44 = vsel %vm834_vm1, %v877_v43, -inf }
 0x278   : > { %927 = vmax.xlane.f32.xlu2 %v926_v44 }
 0x2a2   : > { %v925_v45 = vpop.xlane.xlu0 %924 }
 0x2a3   : > { %v935_v46 = vsub.f32 %v855_v26, %v925_v45 }
 0x2a5   : > { %v939_v47 = vmul.f32 1.442695, %v935_v46 }
 0x2a7   : > { %1969 = vpow2.f32 %v939_v47 }
 0x2ad   : > { %v1970_v48 = vpop.eup %1969 }
 0x2ae   : > { %v947_v49 = vsel %vm834_vm1, %v1970_v48, 0.0 }
 0x2af   : > { %948 = vadd.xlane.f32.xlu1 %v947_v49 }
 0x2e6   : > { %v931_v50 = vpop.xlane.xlu1 %930 }
 0x2e7   : > { %v937_v51 = vsub.f32 %v899_v36, %v931_v50  ;;  %v934_v52 = vpop.xlane.xlu0 %933 }
 0x2e8   : > { %v938_v53 = vsub.f32 %v921_v38, %v934_v52 }
 0x2e9   : > { %v943_v54 = vmul.f32 1.442695, %v937_v51 }
 0x2ea   : > { %v945_v55 = vmul.f32 1.442695, %v938_v53 }
 0x2eb   : > { %1971 = vpow2.f32 %v943_v54  ;;  %v928_v56 = vpop.xlane.xlu2 %927 }
 0x2ec   : > { %1973 = vpow2.f32 %v945_v55  ;;  %v936_v57 = vsub.f32 %v877_v43, %v928_v56 }
 0x2ee   : > { %v941_v58 = vmul.f32 1.442695, %v936_v57 }
 0x2f0   : > { %1975 = vpow2.f32 %v941_v58 }
 0x2f1   : > { %v2611_v59 = vpop.eup %1971 }
 0x2f2   : > { %v2613_v60 = vpop.eup %1973  ;;  %v953_v61 = vsel %vm834_vm1, %v2611_v59, 0.0 }
 0x2f3   : > { %954 = vadd.xlane.f32.xlu0 %v953_v61  ;;  %v956_v62 = vsel %vm834_vm1, %v2613_v60, 0.0 }
 0x2f4   : > { %957 = vadd.xlane.f32.xlu1 %v956_v62  ;;  %v2335_v62 = vmov 1983009808  }
 0x2f6   : > { %v2619_v63 = vpop.eup %1975 }
 0x2f7   : > { %v950_v0 = vsel %vm834_vm1, %v2619_v63, 0.0 }
 0x2f8   : > { %951 = vadd.xlane.f32.xlu2 %v950_v0 }
 0x307   : > { %696 = vrot.lane.b32.xlu0 %v672_v1, %s2334_s28 }
 0x30d   : > { %699 = vrot.lane.b32.xlu1 %v672_v1, %s2332_s14 }
 0x310   : > { %693 = vrot.lane.b32.xlu2 %v672_v1, %s2333_s16 }
 0x322   : > { %v949_v2 = vpop.xlane.xlu1 %948 }
 0x323   : > { %1977 = vrcp.f32 %v949_v2  ;;  %v970_v6 = vand.u32 2147483648, %v949_v2  ;;  %v968_v8 = vand.u32 2147483647, %v949_v2  ;;  %vm964_vm3 = vweird.f32 %v949_v2 }
 0x325   : > { %v971_v10 = vor.u32 1.1754944e-38, %v970_v6  ;;  %vm969_vm5 = vcmp.eq.f32.partialorder %v968_v8, 8.507059e+37  ;;  %v2336_v8 = vmov 1934713408  }
 0x329   : > { %v1978_v3 = vpop.eup %1977  ;;  %1019 = vxpose.xlu0.b32.start.end [1/1] (short) (narrow) %v672_v1, 8 }
 0x32a   : > { %v960_v4 = vmul.f32 %v1978_v3, %v949_v2  ;;  %vm965_vm2 = vweird.f32 %v1978_v3 }
 0x32b   : > { %vm966_vm4 = vmor %vm964_vm3, %vm965_vm2 }
 0x32c   : > { %v961_v5 = vsub.f32 1.0, %v960_v4 }
 0x32e   : > { %v962_v7 = vmul.f32 %v1978_v3, %v961_v5 }
 0x330   : > { %v963_v9 = vadd.f32 %v1978_v3, %v962_v7 }
 0x332   : > { %v967_v11 = vsel %vm966_vm4, %v1978_v3, %v963_v9  ;;  %vm1380_vm4 = vcmask 1047556   ;;  %v1409_v9 = vunpack.c.l.s4 %v2336_v8 }
 0x333   : > { %v972_v12 = vsel %vm969_vm5, %v971_v10, %v967_v11 }
 0x334   : > { %v1015_v13 = vmul.f32 %v1970_v48, %v972_v12 }
 0x336   : > { %1820 = vmatpush.xpose.msk.msrb.mxu2 %vm834_vm1, %v1015_v13  ;;  %1508 = vst.msk [vmem:[%s2629_s6] sm:$0xff] %vm834_vm1, %v1015_v13  ;;  %v2651_v13 = vunpack.c.0.s8 %v1409_v9 }
 0x366   : > { %v955_v14 = vpop.xlane.xlu0 %954 }
 0x367   : > { %v958_v15 = vpop.xlane.xlu1 %957  ;;  %1979 = vrcp.f32 %v955_v14  ;;  %v996_v22 = vand.u32 2147483647, %v955_v14  ;;  %v998_v25 = vand.u32 2147483648, %v955_v14  ;;  %vm992_vm9 = vweird.f32 %v955_v14 }
 0x368   : > { %1981 = vrcp.f32 %v958_v15  ;;  %v1010_v24 = vand.u32 2147483647, %v958_v15  ;;  %v1012_v27 = vand.u32 2147483648, %v958_v15  ;;  %vm1006_vm8 = vweird.f32 %v958_v15 }
 0x369   : > { %vm997_vm10 = vcmp.eq.f32.partialorder %v996_v22, 8.507059e+37  ;;  %v999_v34 = vor.u32 1.1754944e-38, %v998_v25 }
 0x36a   : > { %vm1011_vm11 = vcmp.eq.f32.partialorder %v1010_v24, 8.507059e+37  ;;  %v1013_v36 = vor.u32 1.1754944e-38, %v1012_v27 }
 0x36b   : > { %v952_v16 = vpop.xlane.xlu2 %951 }
 0x36c   : > { %1983 = vrcp.f32 %v952_v16  ;;  %v982_v38 = vand.u32 2147483647, %v952_v16  ;;  %v984_v39 = vand.u32 2147483648, %v952_v16  ;;  %vm978_vm15 = vweird.f32 %v952_v16 }
 0x36d   : > { %v1980_v17 = vpop.eup %1979 }
 0x36e   : > { %v1982_v18 = vpop.eup %1981  ;;  %v988_v19 = vmul.f32 %v1980_v17, %v955_v14  ;;  %vm993_vm6 = vweird.f32 %v1980_v17  ;;  %v985_v48 = vor.u32 1.1754944e-38, %v984_v39  ;;  %vm983_vm3 = vcmp.eq.f32.partialorder %v982_v38, 8.507059e+37 }
 0x36f   : > { %v1002_v20 = vmul.f32 %v1982_v18, %v958_v15  ;;  %vm1007_vm7 = vweird.f32 %v1982_v18  ;;  %vm994_vm12 = vmor %vm992_vm9, %vm993_vm6 }
 0x370   : > { %v989_v21 = vsub.f32 1.0, %v988_v19  ;;  %vm1008_vm13 = vmor %vm1006_vm8, %vm1007_vm7 }
 0x371   : > { %v1003_v23 = vsub.f32 1.0, %v1002_v20 }
 0x372   : > { %v1984_v26 = vpop.eup %1983  ;;  %v990_v28 = vmul.f32 %v1980_v17, %v989_v21 }
 0x373   : > { %v1004_v29 = vmul.f32 %v1982_v18, %v1003_v23  ;;  %v974_v30 = vmul.f32 %v1984_v26, %v952_v16  ;;  %v694_v31 = vpop.permute.xlu2 %693  ;;  %vm979_vm14 = vweird.f32 %v1984_v26 }
 0x374   : > { %v991_v32 = vadd.f32 %v1980_v17, %v990_v28  ;;  %1051 = vxpose.xlu2.b32.start.end [1/1] (short) (narrow) %v694_v31, 8  ;;  %vm980_vm2 = vmor %vm978_vm15, %vm979_vm14 }
 0x375   : > { %v1005_v33 = vadd.f32 %v1982_v18, %v1004_v29  ;;  %v975_v35 = vsub.f32 1.0, %v974_v30 }
 0x376   : > { %v995_v37 = vsel %vm994_vm12, %v1980_v17, %v991_v32 }
 0x377   : > { %v1009_v40 = vsel %vm1008_vm13, %v1982_v18, %v1005_v33  ;;  %v1000_v41 = vsel %vm997_vm10, %v999_v34, %v995_v37  ;;  %v976_v42 = vmul.f32 %v1984_v26, %v975_v35 }
 0x378   : > { %v1014_v43 = vsel %vm1011_vm11, %v1013_v36, %v1009_v40  ;;  %v1017_v44 = vmul.f32 %v2611_v59, %v1000_v41 }
 0x379   : > { %v977_v45 = vadd.f32 %v1984_v26, %v976_v42  ;;  %v697_v46 = vpop.permute.xlu0 %696  ;;  %v1018_v47 = vmul.f32 %v2613_v60, %v1014_v43 }
 0x37a   : > { %1824 = vmatpush.xpose.msk.msra.mxu0 %vm834_vm1, %v1017_v44  ;;  %1510 = vst.msk [vmem:[%s2629_s6 + $0x10] sm:$0xff] %vm834_vm1, %v1017_v44  ;;  %1083 = vxpose.xlu1.b32.start.end [1/1] (short) (narrow) %v697_v46, 8 }
 0x37b   : > { %v981_v49 = vsel %vm980_vm2, %v1984_v26, %v977_v45  ;;  %1826 = vmatpush.xpose.msk.msra.mxu1 %vm834_vm1, %v1018_v47  ;;  %1511 = vst.msk [vmem:[%s2629_s6 + $0x18] sm:$0xff] %vm834_vm1, %v1018_v47 }
 0x37c   : > { %v986_v50 = vsel %vm983_vm3, %v985_v48, %v981_v49 }
 0x37d   : > { %v1016_v51 = vmul.f32 %v2619_v63, %v986_v50  ;;  %v1385_v63 = vunpack.c.l.s4 %v2335_v62 }
 0x37f   : > { %1822 = vmatpush.xpose.msk.msra.mxu3 %vm834_vm1, %v1016_v51  ;;  %1509 = vst.msk [vmem:[%s2629_s6 + $0x8] sm:$0xff] %vm834_vm1, %v1016_v51  ;;  %v700_v52 = vpop.permute.xlu1 %699  ;;  %v1386_v3 = vunpack.c.0.s8 %v1385_v63 }
 0x380   : > { %1115 = vxpose.xlu0.b32.start.end [1/1] (short) (narrow) %v700_v52, 8 }
 0x3cd   : > { %v1035_v53 = vpop.trf.xlu0 }
 0x3ce   : > { %1821 = vmatmul.msk.f32.vlgmr.msrb.gmra.mxu2 %vm834_vm1, %v1035_v53 }
 0x40d   : > { %v1067_v54 = vpop.trf.xlu2 }
 0x40e   : > { %1823 = vmatmul.msk.f32.vlgmr.msra.gmra.mxu3 %vm834_vm1, %v1067_v54 }
 0x41e   : > { %v1099_v55 = vpop.trf.xlu1 }
 0x41f   : > { %1825 = vmatmul.msk.f32.vlgmr.msra.gmra.mxu0 %vm834_vm1, %v1099_v55 }
 0x424   : > { %v1131_v56 = vpop.trf.xlu0 }
 0x425   : > { %1827 = vmatmul.msk.f32.vlgmr.msra.gmra.mxu1 %vm834_vm1, %v1131_v56 }
 0x451   : > { %v1170_v57 = vpop.f32.mrf.mxu2 }
 0x452   : > { %1251 = vxpose.xlu0.b32.start.end [1/1] (short) (narrow) %v1170_v57, 8 }
 0x491   : > { %v1196_v58 = vpop.f32.mrf.mxu3 }
 0x492   : > { %1283 = vxpose.xlu0.b32.start.end [1/1] (short) (narrow) %v1196_v58, 8 }
 0x49c   : > { %v1222_v59 = vpop.f32.mrf.mxu0 }
 0x49d   : > { %1315 = vxpose.xlu2.b32.start.end [1/1] (short) (narrow) %v1222_v59, 8 }
 0x4a2   : > { %v1248_v60 = vpop.f32.mrf.mxu1 }
 0x4a5   : > { %1347 = vxpose.xlu2.b32.start.end [1/1] (short) (narrow) %v1248_v60, 8 }
 0x4f6   : > { %v1267_v61 = vpop.trf.xlu0 }
 0x4f7   : > { %v1382_v0 = vrot.slane %v1267_v61, 4 }
 0x536   : > { %v1331_v1 = vpop.trf.xlu2  ;;  %v1299_v4 = vpop.trf.xlu0 }
 0x537   : > { %v1379_v2 = vrot.slane %v1331_v1, 4  ;;  %v1383_v5 = vsel %vm1380_vm4, %v1331_v1, %v1382_v0  ;;  %v1394_v7 = vrot.slane %v1299_v4, 4 }
 0x538   : > { %v1391_v10 = vperm.slane %v1383_v5, %v1386_v3 }
 0x539   : > { %v1381_v6 = vsel %vm1380_vm4, %v1379_v2, %v1267_v61 }
 0x53a   : > { %v1387_v11 = vperm.slane %v1381_v6, %v1386_v3  ;;  %v1418_v16 = vrot.slane %v1391_v10, 4 }
 0x53c   : > { %v1406_v19 = vrot.slane %v1387_v11, 4 }
 0x53e   : > { %v1363_v12 = vpop.trf.xlu2 }
 0x53f   : > { %v1392_v14 = vrot.slane %v1363_v12, 4  ;;  %v1395_v15 = vsel %vm1380_vm4, %v1363_v12, %v1394_v7 }
 0x540   : > { %v1403_v17 = vperm.slane %v1395_v15, %v1386_v3 }
 0x541   : > { %v1393_v18 = vsel %vm1380_vm4, %v1392_v14, %v1299_v4 }
 0x542   : > { %v1399_v20 = vperm.slane %v1393_v18, %v1386_v3  ;;  %v1416_v21 = vrot.slane %v1403_v17, 4  ;;  %v1419_v22 = vsel %vm1380_vm4, %v1403_v17, %v1418_v16 }
 0x543   : > { %v1427_v23 = vperm.slane %v1419_v22, %v2651_v13 }
 0x544   : > { %v1404_v24 = vrot.slane %v1399_v20, 4  ;;  %v1407_v25 = vsel %vm1380_vm4, %v1399_v20, %v1406_v19  ;;  %v1417_v26 = vsel %vm1380_vm4, %v1416_v21, %v1391_v10 }
 0x545   : > { %v1415_v27 = vperm.slane %v1407_v25, %v2651_v13  ;;  %v1423_v28 = vperm.slane %v1417_v26, %v2651_v13  ;;  %v1434_v29 = vrot.slane %v1427_v23, 4 }
 0x546   : > { %v1405_v30 = vsel %vm1380_vm4, %v1404_v24, %v1387_v11 }
 0x547   : > { %v1411_v31 = vperm.slane %v1405_v30, %v2651_v13  ;;  %v1430_v32 = vrot.slane %v1415_v27, 4  ;;  %v1432_v33 = vrot.slane %v1423_v28, 4  ;;  %v1435_v34 = vsel %vm1380_vm4, 0.0, %v1434_v29 }
 0x548   : > { %v1447_v35 = vsel %vm1380_vm4, %v1434_v29, %v1423_v28  ;;  %v1452_v36 = vrot.slane %v1435_v34, 4 }
 0x549   : > { %v1428_v37 = vrot.slane %v1411_v31, 4  ;;  %v1431_v38 = vsel %vm1380_vm4, 0.0, %v1430_v32  ;;  %v1433_v39 = vsel %vm1380_vm4, 0.0, %v1432_v33  ;;  %v1451_v40 = vperm.slane %v1447_v35, %v1386_v3 }
 0x54a   : > { %v1441_v41 = vrot.slane %v1431_v38, 4  ;;  %v1436_v42 = vsel %vm1380_vm4, %v1430_v32, %v1411_v31  ;;  %v1453_v43 = vsel %vm1380_vm4, %v1452_v36, %v1433_v39 }
 0x54b   : > { %v1429_v44 = vsel %vm1380_vm4, 0.0, %v1428_v37  ;;  %v1440_v45 = vperm.slane %v1436_v42, %v1386_v3  ;;  %v1457_v46 = vperm.slane %v1453_v43, %v1386_v3  ;;  %v1472_v47 = vrot.slane %v1451_v40, 4 }
 0x54c   : > { %v1442_v48 = vsel %vm1380_vm4, %v1441_v41, %v1429_v44 }
 0x54d   : > { %v1446_v49 = vperm.slane %v1442_v48, %v1386_v3  ;;  %v1460_v50 = vrot.slane %v1440_v45, 4  ;;  %v1473_v51 = vsel %vm1380_vm4, %v1457_v46, %v1472_v47  ;;  %v1470_v52 = vrot.slane %v1457_v46, 4 }
 0x54e   : > { %v1481_v53 = vperm.slane %v1473_v51, %v2651_v13 }
 0x54f   : > { %v1461_v54 = vsel %vm1380_vm4, %v1446_v49, %v1460_v50  ;;  %v1458_v55 = vrot.slane %v1446_v49, 4  ;;  %v1471_v56 = vsel %vm1380_vm4, %v1470_v52, %v1451_v40 }
 0x550   : > { %2222 = shalt.err (!%p2219_p0)
}
 0x551   : > { %s2337_s22 = smov 128   ;;  %s2338_s24 = smov 8   ;;  %v1469_v57 = vperm.slane %v1461_v54, %v2651_v13  ;;  %v1486_v58 = vrot.slane %v1481_v53, 4  ;;  %v1477_v59 = vperm.slane %v1471_v56, %v2651_v13  ;;  %v1459_v60 = vsel %vm1380_vm4, %v1458_v55, %v1440_v45 }
 0x552   : > { %1858 = dma.vmem_to_hbm [thread:$0]  (%p2480_p7), %s2676_s2, 512, %s1550_s20, %s1518_s18, %s2337_s22, %s2337_s22, %s2338_s24   ;;  %v1465_v63 = vperm.slane %v1459_v60, %v2651_v13  ;;  %vm1503_vm5 = vcmask 130048   ;;  %vm1505_vm6 = vcmask 195584  }
 0x553   : > { %v1487_v61 = vsel %vm1380_vm4, %v1486_v58, %v1469_v57  ;;  %v1488_v62 = vrot.slane %v1469_v57, 4  ;;  %v1482_v0 = vrot.slane %v1477_v59, 4  ;;  %s2339_s14 = smov 16   ;;  %s2340_s16 = smov 24  }
 0x554   : > { %1495 = vrot.lane.b32.xlu0 %v1487_v61, %s2339_s14  ;;  %v1484_v2 = vrot.slane %v1465_v63, 4  ;;  %s1830_s28 = sshll.u32 %s2317_s11, 3  ;;  %s2793_s5 = sld [smem:[#allocation34_spill]] }
 0x555   : > { %v1489_v1 = vsel %vm1380_vm4, %v1481_v53, %v1488_v62  ;;  %v1483_v3 = vsel %vm1380_vm4, %v1482_v0, %v1465_v63  ;;  %s576_s7 = scalar_lea.vmem [#allocation14], %s2553_s29  ;;  %s1513_s11 = scalar_lea.sflag [#allocation4], %s2550_s9 }
 0x556   : > { %1499 = vrot.lane.b32.xlu1 %v1489_v1, %s2340_s16  ;;  %v1485_v4 = vsel %vm1380_vm4, %v1477_v59, %v1484_v2  ;;  %s1531_s10 = sshll.u32 %s576_s7, 4  ;;  %s1532_s10 = int_to_ptr.vmem [resolvable:$true] %s1531_s10 }
 0x557   : > { %1491 = vrot.lane.b32.xlu2 %v1485_v4, %s2338_s24 }
 0x55a   : > { %s1529_s17 = scalar_lea.hbm %s2793_s5, %s1830_s28  ;;  %s2243_s8 = scalar_lea.hbm %s2793_s5, 16 }
 0x55b   : > { %s1533_s20 = sshll.u32 %s1529_s17, 4  ;;  %s1534_s20 = int_to_ptr.hbm [resolvable:$true] %s1533_s20 }
 0x55c   : > { %s2237_s18 = sshra.s32 %s1534_s20, 4  ;;  %s2238_s18 = int_to_ptr.hbm [resolvable:$true] %s2237_s18 }
 0x55d   : > { %s2239_s25 = scalar_lea.hbm %s2238_s18, 8  ;;  %p2244_p12 = scmp.lt.s32.totalorder %s2238_s18, %s2793_s5 }
 0x55e   : > { %p2240_p3 = scmp.ne.s32.totalorder %s2238_s18, %s2239_s25  ;;  %p2245_p1 = scmp.lt.s32.totalorder %s2243_s8, %s2239_s25 }
 0x560   : > { %p2241_p5 = pnand %p2240_p3, %p2480_p7  ;;  %p2246_p2 = por %p2245_p1, %p2244_p12 }
 0x562   : > { %p2242_p9 = pneg %p2241_p5 }
 0x564   : > { %p2247_p4 = pnand %p2246_p2, %p2242_p9 }
 0x5b1   : > { %v1492_v5 = vpop.permute.xlu2 %1491 }
 0x5b2   : > { %v1502_v6 = vsel %vm834_vm1, %v1483_v3, %v1492_v5 }
 0x5c6   : > { %v1496_v7 = vpop.permute.xlu0 %1495 }
 0x5c7   : > { %v1504_v8 = vsel %vm1503_vm5, %v1502_v6, %v1496_v7 }
 0x5c8   : > { %v1500_v9 = vpop.permute.xlu1 %1499 }
 0x5c9   : > { %v1506_v10 = vsel %vm1505_vm6, %v1504_v8, %v1500_v9 }
 0x5ca   : > { %1507 = vst.msk [vmem:[%s576_s7] sm:$0xff] %vm597_vm0, %v1506_v10 }
 0x5cb   : > { %2250 = shalt.err (!%p2247_p4)
}
 0x5cc   : > { %1857 = dma.vmem_to_hbm [thread:$0]  (%p2480_p7), %s1532_s10, 128, %s1534_s20, %s1513_s11  }
 0x5cd PF: > { %s2794_s9 = sld [smem:[#allocation24_spill]]  ;;  %p1885_p8 = pnand %p1793_p11, %p2436_p6 }
 0x5cf   : > { %p1886_p10 = pneg %p1885_p8 }
 0x5d3   : > { %s1564_s23 = sand.u32 1, %s2794_s9  }
 0x5d4   : > { %s1565_s22 = scalar_lea.sflag [#allocation4], %s1564_s23 }
 0x5d5   : > { %2296 = dma.done.wait (%p1886_p10), %s1565_s22, 128  }
 0x5d6   : > { %2298 = vsyncadd (%p1886_p10), %s1565_s22, 4294967168  ;;  %s1575_s24 = scalar_lea.sflag [#allocation16], %s1564_s23 }
 0x5d7   : > { %2300 = dma.done.wait (%p1886_p10), %s1575_s24, 512  }
 0x5d8   : > { %2302 = vsyncadd (%p1886_p10), %s1575_s24, 4294966784  ;;  %s36_s13 = sadd.s32 1, %s2325_s13   ;;  %s2796_s0 = sld [smem:[#allocation25_spill]] }
 0x5d9   : > { %p33_p13 = scmp.ge.s32.totalorder %s36_s13, 4   ;;  %s2797_s10 = sld [smem:[#allocation29_spill]] }
 0x5da   : > { %s2798_s14 = sld [smem:[#allocation27_spill]]  ;;  %s2799_s29 = smov %s2309_s30 }
 0x5db   : > { %s2801_s11 = smov %s2321_s12 }
 0x5dc   :  { %35 = sbr.rel (!%p33_p13) target bundleno = 20 (0x14), region = 169 }
 0x5de   : > { %s2800_s30 = smov %s2796_s0 }
 0x5e0   : > { %s2802_s12 = smov %s2798_s14 }
 0x5e1   :  { %1581 = vsyncpa [#allocation3], 1 }
 0x5e2   :  { %1583 = vsyncpa [#allocation3 + $0x1], 1 }
 0x5e3   :  { %1584 = vsyncpa [#allocation6], 1 }
 0x5e4   :  { %1586 = vsyncpa [#allocation6 + $0x1], 1 }
 0x5e5   :  { %1587 = vsyncpa [#allocation9], 1 }
 0x5e6   :  { %1589 = vsyncpa [#allocation9 + $0x1], 1 }
 0x5e7   :  { %1590 = vsyncpa [#allocation12], 1 }
 0x5e8   :  { %1591 = vsyncpa [#allocation4], 1 }
 0x5e9   :  { %1593 = vsyncpa [#allocation4 + $0x1], 1 }
 0x5ea   :  { %1594 = vsyncpa [#allocation16], 1 }
 0x5eb   :  { %1596 = vsyncpa [#allocation16 + $0x1], 1 }

</bundles_post_ra>
